<compile_context>
chip_gen: v7x
topology: tpu7x:2x2x1
jax: 0.10.0
libtpu: 0.0.40
codegen_flags: <defaults>
</compile_context>

<pallas_src>
import functools

import jax
import jax.numpy as jnp
from jax.experimental import pallas as pl
from jax.experimental.pallas import tpu as pltpu

_MIB = 1024 * 1024


def _round_up(x, m):
    return ((x + m - 1) // m) * m


def _vmem_capacity_bytes():
    """Physical per-core VMEM, used to size the tile budget per generation."""
    try:
        return int(pltpu.get_tpu_info().vmem_capacity_bytes)
    except Exception:
        pass
    try:
        kind = jax.devices()[0].device_kind.lower()
    except Exception:
        kind = ""
    if "v7" in kind or "7x" in kind:
        return 64 * _MIB            # v7x: 64 MiB per TensorCore
    if any(t in kind for t in ("v4", "v5", "v6")):
        return 128 * _MIB           # v4 / v5e / v6e: 128 MiB
    return 16 * _MIB                # v2/v3 or unknown: stay conservative


def _router_kernel(x_ref, w_ref, b_ref, out_ref, *, top_k):
    # x_ref: (TM, D), w_ref: (D, E_pad), b_ref: (1, E_pad), out_ref: (TM, E_pad)
    x = x_ref[...]

    # Linear layer on the MXU; f32 accumulation regardless of input dtype.
    logits = jnp.dot(x, w_ref[...], preferred_element_type=jnp.float32) + b_ref[...]

    tm, e = logits.shape
    col = jax.lax.broadcasted_iota(jnp.int32, (tm, e), 1)
    neg_inf = jnp.float32(-jnp.inf)

    # Iterative top-k (unrolled; top_k is a Python constant).  Ties broken by
    # lowest expert index.  Padded experts have logits == -inf (0-weight
    # columns + -inf bias), so they can never win while real experts remain.
    work = logits
    for _ in range(top_k):
        m = jnp.max(work, axis=-1, keepdims=True)
        sel = jnp.min(jnp.where(work == m, col, e), axis=-1, keepdims=True)
        work = jnp.where(col == sel, neg_inf, work)

    # Entries knocked down to -inf in `work` are exactly {top-k picks} ∪
    # {padded experts that were already -inf}; the latter still exp() to 0,
    # so no separate bool mask accumulator is needed.
    sparse = jnp.where(work == neg_inf, logits, neg_inf)

    row_max = jnp.max(sparse, axis=-1, keepdims=True)
    ex = jnp.exp(sparse - row_max)                     # exp(-inf - max) -> 0
    denom = jnp.sum(ex, axis=-1, keepdims=True)
    # Reciprocal-multiply instead of a per-lane divide (exact; approx=True
    # would push it to the otherwise idle EUP if last-ulp parity is not needed).
    inv = pl.reciprocal(denom, approx=False)
    out_ref[...] = (ex * inv).astype(out_ref.dtype)


def init_topk_router_params(weight, bias, *, param_dtype=None):
    """Pad the expert dim to a lane-dense multiple of 128 — call ONCE at init.

    Padded weight columns are 0 and padded bias entries are -inf, so padded
    experts produce exactly -inf logits: never selected by top-k and exp()==0
    in the softmax, leaving the math unchanged.  Optionally casts the weight
    (e.g. to bf16) to halve the resident-weight / activation HBM traffic.
    """
    if param_dtype is not None:
        weight = weight.astype(param_dtype)
    E = weight.shape[1]
    E_pad = _round_up(E, 128)
    w_p = jnp.pad(weight, ((0, 0), (0, E_pad - E)))
    b_p = jnp.pad(bias.astype(jnp.float32), (0, E_pad - E),
                  constant_values=-jnp.inf).reshape(1, E_pad)
    return w_p, b_p


def topk_router(mh_output, w_padded, b_padded, num_experts, top_k, *,
                tm=512, vmem_budget_bytes=None, out_dtype=jnp.float32,
                trim_output=True):
    """mh_output: (B, T, n_embed); w_padded/b_padded from init_topk_router_params."""
    B, T, D = mh_output.shape
    E_pad = w_padded.shape[1]
    assert w_padded.shape[0] == D
    assert b_padded.shape == (1, E_pad)
    assert 0 < top_k <= num_experts <= E_pad
    N = B * T

    # bf16 activations halve the dominant HBM stream: opt in by passing
    # bf16 weights from init_topk_router_params; x follows the weight dtype.
    x2d = mh_output.reshape(N, D)
    if x2d.dtype != w_padded.dtype:
        x2d = x2d.astype(w_padded.dtype)
    # TODO(synk): if n_embed is not a multiple of 128, pad D once at init (both
    # weight rows and activations) so the activation loads are fully lane-dense.

    # ---- Per-generation VMEM budget + explicit Mosaic limit -----------------
    capacity = _vmem_capacity_bytes()
    budget = vmem_budget_bytes if vmem_budget_bytes is not None else capacity // 2

    x_item = jnp.dtype(x2d.dtype).itemsize
    w_item = jnp.dtype(w_padded.dtype).itemsize
    o_item = jnp.dtype(out_dtype).itemsize
    # Resident (single-buffered) weight + bias; x and out tiles double-buffered.
    fixed_bytes = D * E_pad * w_item + E_pad * 4

    def step_bytes(t):
        return 2 * t * D * x_item + 2 * t * E_pad * o_item

    # Row tile: as big as the budget allows, but capped at ceil(N/2) so the
    # grid has >= 2 steps (keeps both v7x TensorCores busy; ~free elsewhere).
    tm_cap = max(8, _round_up(-(-N // 2), 8))
    tm_eff = max(8, min(_round_up(tm, 8), tm_cap))
    while tm_eff > 8 and fixed_bytes + step_bytes(tm_eff) > budget:
        tm_eff = max(8, _round_up(tm_eff // 2, 8))
    # TODO(synk): for very large resident weights (D*E_pad*itemsize >> budget,
    # e.g. D >= 8192 f32 on v7x) add a K grid axis streaming weight tiles into
    # an f32 VMEM logits accumulator instead of keeping (D, E_pad) resident.

    vmem_limit = min(capacity,
                     max(fixed_bytes + step_bytes(tm_eff) + 2 * _MIB, 16 * _MIB))

    # ---- Pad the token axis instead of requiring divisibility ---------------
    N_pad = _round_up(N, tm_eff)
    if N_pad != N:
        x2d = jnp.pad(x2d, ((0, N_pad - N), (0, 0)))

    kernel = functools.partial(_router_kernel, top_k=top_k)

    def build(single_buffer_params):
        pmode = dict(pipeline_mode=pl.Buffered(1)) if single_buffer_params else {}
        return pl.pallas_call(
            kernel,
            out_shape=jax.ShapeDtypeStruct((N_pad, E_pad), out_dtype),
            grid_spec=pltpu.PrefetchScalarGridSpec(
                num_scalar_prefetch=0,
                grid=(N_pad // tm_eff,),
                in_specs=[
                    pl.BlockSpec((tm_eff, D), lambda i: (i, 0)),           # token tile
                    pl.BlockSpec((D, E_pad), lambda i: (0, 0), **pmode),   # resident W
                    pl.BlockSpec((1, E_pad), lambda i: (0, 0), **pmode),   # resident b
                ],
                out_specs=pl.BlockSpec((tm_eff, E_pad), lambda i: (i, 0)),
            ),
            compiler_params=pltpu.CompilerParams(
                dimension_semantics=("parallel",),
                vmem_limit_bytes=int(vmem_limit)),
        )

    try:
        # Constant index_map => weight/bias fetched once; Buffered(1) drops the
        # useless second VMEM buffer so the row tile can stay large.
        out2d = build(True)(x2d, w_padded, b_padded)
    except Exception:
        # JAX version without per-BlockSpec pipeline_mode support: default buffering.
        out2d = build(False)(x2d, w_padded, b_padded)

    if trim_output:
        if N_pad != N or E_pad != num_experts:
            out2d = out2d[:N, :num_experts]     # skipped when no padding was added
        return out2d.reshape(B, T, num_experts)
    # Padded expert columns are exactly 0 — let the consumer fuse the slice.
    if N_pad != N:
        out2d = out2d[:N]
    return out2d.reshape(B, T, E_pad)


def _reference(mh_output, weight, bias, top_k):
    logits = jnp.einsum("btd,de->bte", mh_output, weight) + bias
    work = logits
    mask = jnp.zeros_like(logits, dtype=bool)
    e = logits.shape[-1]
    col = jnp.arange(e)
    for _ in range(top_k):
        m = jnp.max(work, axis=-1, keepdims=True)
        is_max = work == m
        sel = jnp.min(jnp.where(is_max, col, e), axis=-1, keepdims=True)
        onehot = col == sel
        mask = mask | onehot
        work = jnp.where(onehot, -jnp.inf, work)
    sparse = jnp.where(mask, logits, -jnp.inf)
    return jax.nn.softmax(sparse, axis=-1)


if __name__ == "__main__":
    B, T, n_embed, num_experts, top_k = 2, 8, 32, 8, 2

    key = jax.random.PRNGKey(0)
    kx, kw, kb = jax.random.split(key, 3)
    mh_output = jax.random.normal(kx, (B, T, n_embed), dtype=jnp.float32)
    # deterministic "Linear(n_embed, num_experts)" parameters
    weight = jax.random.normal(kw, (n_embed, num_experts), dtype=jnp.float32) * 0.1
    bias = jax.random.normal(kb, (num_experts,), dtype=jnp.float32) * 0.1

    # Pad/pack the router parameters once (init time), then run the kernel.
    w_p, b_p = init_topk_router_params(weight, bias)
    out = topk_router(mh_output, w_p, b_p, num_experts, top_k)
    out = jax.block_until_ready(out)

    ref = _reference(mh_output, weight, bias, top_k)
    assert out.shape == (B, T, num_experts)
    assert jnp.allclose(out, ref, atol=1e-5, rtol=1e-5)
    # each row's probabilities sum to 1 and have exactly top_k nonzeros
    assert jnp.allclose(out.sum(-1), 1.0, atol=1e-5)
    assert int((out > 0).sum()) == B * T * top_k

    print("KERNEL_OK")
</pallas_src>

<mosaic_0001>
module attributes {stable_mosaic.version = 11 : i64} {
  func.func @_router_kernel(%arg0: i32, %arg1: memref<8x32xf32, #tpu.memory_space<vmem>>, %arg2: memref<32x128xf32, #tpu.memory_space<vmem>>, %arg3: memref<1x128xf32, #tpu.memory_space<vmem>>, %arg4: memref<8x128xf32, #tpu.memory_space<vmem>>) attributes {dimension_semantics = [#tpu.dimension_semantics<parallel>], iteration_bounds = array<i64: 2>, scalar_prefetch = 0 : i64, scratch_operands = 0 : i64, tpu.core_type = #tpu.core_type<tc>, window_params = [{transform_indices = @transform_0, window_bounds = array<i64: 8, 32>}, {pipeline_mode = #tpu.pipeline_mode<synchronous>, transform_indices = @transform_1, window_bounds = array<i64: 32, 128>}, {pipeline_mode = #tpu.pipeline_mode<synchronous>, transform_indices = @transform_2, window_bounds = array<i64: 1, 128>}, {transform_indices = @transform_3, window_bounds = array<i64: 8, 128>}]} {
    %c0 = arith.constant 0 : index
    %c0_0 = arith.constant 0 : index
    %0 = vector.load %arg1[%c0, %c0_0] : memref<8x32xf32, #tpu.memory_space<vmem>>, vector<8x32xf32>
    %c0_1 = arith.constant 0 : index
    %c0_2 = arith.constant 0 : index
    %1 = vector.load %arg2[%c0_1, %c0_2] : memref<32x128xf32, #tpu.memory_space<vmem>>, vector<32x128xf32>
    %cst = arith.constant dense<0.000000e+00> : vector<8x128xf32>
    %2 = tpu.matmul %0, %1, %cst {dimension_numbers = #tpu.dot_dimension_numbers<[1], [0], [0], [1], [0, 0, 1, 1], [], []>} : vector<8x32xf32>, vector<32x128xf32>, vector<8x128xf32> -> vector<8x128xf32>
    %c0_3 = arith.constant 0 : index
    %c0_4 = arith.constant 0 : index
    %3 = vector.load %arg3[%c0_3, %c0_4] : memref<1x128xf32, #tpu.memory_space<vmem>>, vector<1x128xf32>
    %4 = vector.broadcast %3 : vector<1x128xf32> to vector<8x128xf32>
    %5 = arith.addf %2, %4 : vector<8x128xf32>
    %6 = tpu.iota {dimensions = array<i32: 1>} : vector<8x128xi32>
    %cst_5 = arith.constant dense<0xFF800000> : vector<8xf32>
    %7 = vector.multi_reduction <maximumf>, %5, %cst_5 [1] : vector<8x128xf32> to vector<8xf32>
    %8 = vector.shape_cast %7 : vector<8xf32> to vector<8x1xf32>
    %9 = vector.broadcast %8 : vector<8x1xf32> to vector<8x128xf32>
    %10 = arith.cmpf oeq, %5, %9 : vector<8x128xf32>
    %c128_i32 = arith.constant 128 : i32
    %11 = vector.broadcast %c128_i32 : i32 to vector<8x128xi32>
    %12 = arith.select %10, %6, %11 : vector<8x128xi1>, vector<8x128xi32>
    %cst_6 = arith.constant dense<2147483647> : vector<8xi32>
    %13 = vector.multi_reduction <minsi>, %12, %cst_6 [1] : vector<8x128xi32> to vector<8xi32>
    %14 = vector.shape_cast %13 : vector<8xi32> to vector<8x1xi32>
    %15 = vector.broadcast %14 : vector<8x1xi32> to vector<8x128xi32>
    %16 = arith.cmpi eq, %6, %15 : vector<8x128xi32>
    %cst_7 = arith.constant 0xFF800000 : f32
    %17 = vector.broadcast %cst_7 : f32 to vector<8x128xf32>
    %18 = arith.select %16, %17, %5 : vector<8x128xi1>, vector<8x128xf32>
    %cst_8 = arith.constant dense<0xFF800000> : vector<8xf32>
    %19 = vector.multi_reduction <maximumf>, %18, %cst_8 [1] : vector<8x128xf32> to vector<8xf32>
    %20 = vector.shape_cast %19 : vector<8xf32> to vector<8x1xf32>
    %21 = vector.broadcast %20 : vector<8x1xf32> to vector<8x128xf32>
    %22 = arith.cmpf oeq, %18, %21 : vector<8x128xf32>
    %c128_i32_9 = arith.constant 128 : i32
    %23 = vector.broadcast %c128_i32_9 : i32 to vector<8x128xi32>
    %24 = arith.select %22, %6, %23 : vector<8x128xi1>, vector<8x128xi32>
    %cst_10 = arith.constant dense<2147483647> : vector<8xi32>
    %25 = vector.multi_reduction <minsi>, %24, %cst_10 [1] : vector<8x128xi32> to vector<8xi32>
    %26 = vector.shape_cast %25 : vector<8xi32> to vector<8x1xi32>
    %27 = vector.broadcast %26 : vector<8x1xi32> to vector<8x128xi32>
    %28 = arith.cmpi eq, %6, %27 : vector<8x128xi32>
    %cst_11 = arith.constant 0xFF800000 : f32
    %29 = vector.broadcast %cst_11 : f32 to vector<8x128xf32>
    %30 = arith.select %28, %29, %18 : vector<8x128xi1>, vector<8x128xf32>
    %cst_12 = arith.constant 0xFF800000 : f32
    %31 = vector.broadcast %cst_12 : f32 to vector<8x128xf32>
    %32 = arith.cmpf oeq, %30, %31 : vector<8x128xf32>
    %cst_13 = arith.constant 0xFF800000 : f32
    %33 = vector.broadcast %cst_13 : f32 to vector<8x128xf32>
    %34 = arith.select %32, %5, %33 : vector<8x128xi1>, vector<8x128xf32>
    %cst_14 = arith.constant dense<0xFF800000> : vector<8xf32>
    %35 = vector.multi_reduction <maximumf>, %34, %cst_14 [1] : vector<8x128xf32> to vector<8xf32>
    %36 = vector.shape_cast %35 : vector<8xf32> to vector<8x1xf32>
    %37 = vector.broadcast %36 : vector<8x1xf32> to vector<8x128xf32>
    %38 = arith.subf %34, %37 : vector<8x128xf32>
    %39 = math.exp %38 : vector<8x128xf32>
    %cst_15 = arith.constant dense<0.000000e+00> : vector<8xf32>
    %40 = vector.multi_reduction <add>, %39, %cst_15 [1] : vector<8x128xf32> to vector<8xf32>
    %41 = vector.shape_cast %40 : vector<8xf32> to vector<8x1xf32>
    %42 = tpu.reciprocal %41 : vector<8x1xf32> -> vector<8x1xf32>
    %43 = vector.broadcast %42 : vector<8x1xf32> to vector<8x128xf32>
    %44 = arith.mulf %39, %43 : vector<8x128xf32>
    %c0_16 = arith.constant 0 : index
    %c0_17 = arith.constant 0 : index
    %45 = vector.load %arg4[%c0_16, %c0_17] : memref<8x128xf32, #tpu.memory_space<vmem>>, vector<8x128xf32>
    tpu.vector_store %arg4[%c0_16, %c0_17], %44 {strides = array<i32>} : memref<8x128xf32, #tpu.memory_space<vmem>>, vector<8x128xf32>,
    return
  }
  func.func @transform_0(%arg0: i32) -> (i32, i32) {
    %c0_i32 = arith.constant 0 : i32
    %c0_i32_0 = arith.constant 0 : i32
    return %arg0, %c0_i32 : i32, i32
  }
  func.func @transform_1(%arg0: i32) -> (i32, i32) {
    %c0_i32 = arith.constant 0 : i32
    %c0_i32_0 = arith.constant 0 : i32
    %c0_i32_1 = arith.constant 0 : i32
    return %c0_i32, %c0_i32_0 : i32, i32
  }
  func.func @transform_2(%arg0: i32) -> (i32, i32) {
    %c0_i32 = arith.constant 0 : i32
    %c0_i32_0 = arith.constant 0 : i32
    %c0_i32_1 = arith.constant 0 : i32
    return %c0_i32, %c0_i32_0 : i32, i32
  }
  func.func @transform_3(%arg0: i32) -> (i32, i32) {
    %c0_i32 = arith.constant 0 : i32
    %c0_i32_0 = arith.constant 0 : i32
    return %arg0, %c0_i32 : i32, i32
  }
}

module attributes {stable_mosaic.version = 11 : i64} {
  func.func @_router_kernel(%arg0: i32, %arg1: memref<8x32xf32, #tpu.memory_space<vmem>>, %arg2: memref<32x128xf32, #tpu.memory_space<vmem>>, %arg3: memref<1x128xf32, #tpu.memory_space<vmem>>, %arg4: memref<8x128xf32, #tpu.memory_space<vmem>>) attributes {dimension_semantics = [#tpu.dimension_semantics<parallel>], iteration_bounds = array<i64: 2>, scalar_prefetch = 0 : i64, scratch_operands = 0 : i64, tpu.core_type = #tpu.core_type<tc>, window_params = [{transform_indices = @transform_0, window_bounds = array<i64: 8, 32>}, {pipeline_mode = #tpu.pipeline_mode<synchronous>, transform_indices = @transform_1, window_bounds = array<i64: 32, 128>}, {pipeline_mode = #tpu.pipeline_mode<synchronous>, transform_indices = @transform_2, window_bounds = array<i64: 1, 128>}, {transform_indices = @transform_3, window_bounds = array<i64: 8, 128>}]} {
    %c0 = arith.constant 0 : index
    %c0_0 = arith.constant 0 : index
    %0 = vector.load %arg1[%c0, %c0_0] : memref<8x32xf32, #tpu.memory_space<vmem>>, vector<8x32xf32>
    %c0_1 = arith.constant 0 : index
    %c0_2 = arith.constant 0 : index
    %1 = vector.load %arg2[%c0_1, %c0_2] : memref<32x128xf32, #tpu.memory_space<vmem>>, vector<32x128xf32>
    %cst = arith.constant dense<0.000000e+00> : vector<8x128xf32>
    %2 = tpu.matmul %0, %1, %cst {dimension_numbers = #tpu.dot_dimension_numbers<[1], [0], [0], [1], [0, 0, 1, 1], [], []>} : vector<8x32xf32>, vector<32x128xf32>, vector<8x128xf32> -> vector<8x128xf32>
    %c0_3 = arith.constant 0 : index
    %c0_4 = arith.constant 0 : index
    %3 = vector.load %arg3[%c0_3, %c0_4] : memref<1x128xf32, #tpu.memory_space<vmem>>, vector<1x128xf32>
    %4 = vector.broadcast %3 : vector<1x128xf32> to vector<8x128xf32>
    %5 = arith.addf %2, %4 : vector<8x128xf32>
    %6 = tpu.iota {dimensions = array<i32: 1>} : vector<8x128xi32>
    %cst_5 = arith.constant dense<0xFF800000> : vector<8xf32>
    %7 = vector.multi_reduction <maximumf>, %5, %cst_5 [1] : vector<8x128xf32> to vector<8xf32>
    %8 = vector.shape_cast %7 : vector<8xf32> to vector<8x1xf32>
    %9 = vector.broadcast %8 : vector<8x1xf32> to vector<8x128xf32>
    %10 = arith.cmpf oeq, %5, %9 : vector<8x128xf32>
    %c128_i32 = arith.constant 128 : i32
    %11 = vector.broadcast %c128_i32 : i32 to vector<8x128xi32>
    %12 = arith.select %10, %6, %11 : vector<8x128xi1>, vector<8x128xi32>
    %cst_6 = arith.constant dense<2147483647> : vector<8xi32>
    %13 = vector.multi_reduction <minsi>, %12, %cst_6 [1] : vector<8x128xi32> to vector<8xi32>
    %14 = vector.shape_cast %13 : vector<8xi32> to vector<8x1xi32>
    %15 = vector.broadcast %14 : vector<8x1xi32> to vector<8x128xi32>
    %16 = arith.cmpi eq, %6, %15 : vector<8x128xi32>
    %cst_7 = arith.constant 0xFF800000 : f32
    %17 = vector.broadcast %cst_7 : f32 to vector<8x128xf32>
    %18 = arith.select %16, %17, %5 : vector<8x128xi1>, vector<8x128xf32>
    %cst_8 = arith.constant dense<0xFF800000> : vector<8xf32>
    %19 = vector.multi_reduction <maximumf>, %18, %cst_8 [1] : vector<8x128xf32> to vector<8xf32>
    %20 = vector.shape_cast %19 : vector<8xf32> to vector<8x1xf32>
    %21 = vector.broadcast %20 : vector<8x1xf32> to vector<8x128xf32>
    %22 = arith.cmpf oeq, %18, %21 : vector<8x128xf32>
    %c128_i32_9 = arith.constant 128 : i32
    %23 = vector.broadcast %c128_i32_9 : i32 to vector<8x128xi32>
    %24 = arith.select %22, %6, %23 : vector<8x128xi1>, vector<8x128xi32>
    %cst_10 = arith.constant dense<2147483647> : vector<8xi32>
    %25 = vector.multi_reduction <minsi>, %24, %cst_10 [1] : vector<8x128xi32> to vector<8xi32>
    %26 = vector.shape_cast %25 : vector<8xi32> to vector<8x1xi32>
    %27 = vector.broadcast %26 : vector<8x1xi32> to vector<8x128xi32>
    %28 = arith.cmpi eq, %6, %27 : vector<8x128xi32>
    %cst_11 = arith.constant 0xFF800000 : f32
    %29 = vector.broadcast %cst_11 : f32 to vector<8x128xf32>
    %30 = arith.select %28, %29, %18 : vector<8x128xi1>, vector<8x128xf32>
    %cst_12 = arith.constant 0xFF800000 : f32
    %31 = vector.broadcast %cst_12 : f32 to vector<8x128xf32>
    %32 = arith.cmpf oeq, %30, %31 : vector<8x128xf32>
    %cst_13 = arith.constant 0xFF800000 : f32
    %33 = vector.broadcast %cst_13 : f32 to vector<8x128xf32>
    %34 = arith.select %32, %5, %33 : vector<8x128xi1>, vector<8x128xf32>
    %cst_14 = arith.constant dense<0xFF800000> : vector<8xf32>
    %35 = vector.multi_reduction <maximumf>, %34, %cst_14 [1] : vector<8x128xf32> to vector<8xf32>
    %36 = vector.shape_cast %35 : vector<8xf32> to vector<8x1xf32>
    %37 = vector.broadcast %36 : vector<8x1xf32> to vector<8x128xf32>
    %38 = arith.subf %34, %37 : vector<8x128xf32>
    %39 = math.exp %38 : vector<8x128xf32>
    %cst_15 = arith.constant dense<0.000000e+00> : vector<8xf32>
    %40 = vector.multi_reduction <add>, %39, %cst_15 [1] : vector<8x128xf32> to vector<8xf32>
    %41 = vector.shape_cast %40 : vector<8xf32> to vector<8x1xf32>
    %42 = tpu.reciprocal %41 : vector<8x1xf32> -> vector<8x1xf32>
    %43 = vector.broadcast %42 : vector<8x1xf32> to vector<8x128xf32>
    %44 = arith.mulf %39, %43 : vector<8x128xf32>
    %c0_16 = arith.constant 0 : index
    %c0_17 = arith.constant 0 : index
    %45 = vector.load %arg4[%c0_16, %c0_17] : memref<8x128xf32, #tpu.memory_space<vmem>>, vector<8x128xf32>
    tpu.vector_store %arg4[%c0_16, %c0_17], %44 {strides = array<i32>} : memref<8x128xf32, #tpu.memory_space<vmem>>, vector<8x128xf32>,
    return
  }
  func.func @transform_0(%arg0: i32) -> (i32, i32) {
    %c0_i32 = arith.constant 0 : i32
    %c0_i32_0 = arith.constant 0 : i32
    return %arg0, %c0_i32 : i32, i32
  }
  func.func @transform_1(%arg0: i32) -> (i32, i32) {
    %c0_i32 = arith.constant 0 : i32
    %c0_i32_0 = arith.constant 0 : i32
    %c0_i32_1 = arith.constant 0 : i32
    return %c0_i32, %c0_i32_0 : i32, i32
  }
  func.func @transform_2(%arg0: i32) -> (i32, i32) {
    %c0_i32 = arith.constant 0 : i32
    %c0_i32_0 = arith.constant 0 : i32
    %c0_i32_1 = arith.constant 0 : i32
    return %c0_i32, %c0_i32_0 : i32, i32
  }
  func.func @transform_3(%arg0: i32) -> (i32, i32) {
    %c0_i32 = arith.constant 0 : i32
    %c0_i32_0 = arith.constant 0 : i32
    return %arg0, %c0_i32 : i32, i32
  }
}

</mosaic_0001>

<bundles_post_ra>
// kernel: tpu_custom_call.1
= control target key start
LH: loop header
LB: loop body
LE: loop exit
PB: predicated region body
PF: predicated region fallthrough
CT: control target
= control target key end

     0   :  { %8 = vsyncpa [#allocation3], 0  ;;  %s900_s0 = inlined_call_operand.hbm [shape: f32[16,32], index: 0, kind: input, shape index: {}]   ;;  %s901_s1 = inlined_call_operand.hbm [shape: f32[32,128], index: 1, kind: input, shape index: {}]   ;;  %s902_s2 = inlined_call_operand.vmem [shape: f32[1,128], index: 2, kind: input, shape index: {}]   ;;  %s903_s3 = inlined_call_operand.hbm [shape: f32[16,128], index: 3, kind: output, shape index: {}]  }
   0x1   :  { %10 = vsyncpa [#allocation3 + $0x1], 0 }
   0x2   :  { %11 = vsyncpa [#allocation6], 0 }
   0x3   :  { %12 = vsyncpa [#allocation4], 0 }
   0x4   :  { %14 = vsyncpa [#allocation4 + $0x1], 0  ;;  %s697_s12 = smov 0   ;;  %s699_s13 = smov 0  }
   0x5   :  { %s701_s14 = smov 0   ;;  %s703_s15 = smov 0  }
   0x6 LB: > { %s718_s16 = sadd.s32 4294967295, %s667_s15   ;;  %s435_s17 = sadd.s32 4294967294, %s667_s15   ;;  %s667_s15 = sphi %s703_s15, %s923_s15   ;;  %s663_s14 = sphi %s701_s14, %s922_s14   ;;  %s659_s13 = sphi %s699_s13, %s921_s13   ;;  %s655_s12 = sphi %s697_s12, %s920_s12  }
   0x7   : > { %p40_p0 = scmp.ne.s32.totalorder %s659_s13, %s655_s12  ;;  %p904_p1 = scmp.eq.s32.totalorder %s718_s16, 0 }
   0x8   : > { %p112_p3 = scmp.eq.s32.totalorder %s435_s17, 1  ;;  %p436_p5 = scmp.ge.s32.totalorder %s667_s15, 1 }
   0x9   : > { %p727_p4 = por %p904_p1, %p40_p0  ;;  %p119_p7 = scmp.lt.s32.totalorder %s667_s15, 3 }
   0xa   : > { %p732_p6 = por %p112_p3, %p40_p0  ;;  %s669_s21 = smov [#allocation5]  }
   0xb   : > { %s907_s18 = scalar_select %p727_p4, 1, 0 }
   0xc   : > { %s908_s19 = scalar_select %p732_p6, 1, 0 }
   0xd   : > { %p737_p8 = pnand %p436_p5, %p119_p7  ;;  %s131_s22 = sshll.u32 %s669_s21, 4  ;;  %s741_s22 = int_to_ptr.vmem [resolvable:$true] %s131_s22 }
   0xe   : > { %s753_s24 = sadd.s32 1, %s667_s15   ;;  %s27_s25 = sadd.s32 1, %s663_s14 }
   0xf   : > { %s909_s20 = scalar_select %p737_p8, 1, 0 }
  0x10   : > { %p481_p9 = pneg %p737_p8  ;;  %s24_s26 = ssub.s32 %s667_s15, %s753_s24 }
  0x11   : > { %s539_s29 = scalar_lea.hbm %s901_s1, 512 }
  0x12   : > { %p748_p11 = pnand %p481_p9, %p904_p1  ;;  %p540_p12 = scmp.ne.s32.totalorder %s901_s1, %s539_s29 }
  0x13   : > { %p546_p5 = scmp.lt.u32.totalorder %s539_s29, %s901_s1 }
  0x14   : > { %p541_p13 = pneg %p748_p11 }
  0x16   : > { %p542_p0 = pnand %p541_p13, %p540_p12 }
  0x18   : > { %p543_p3 = pneg %p542_p0 }
  0x1a   : > { %p548_p7 = pnand %p546_p5, %p543_p3 }
  0x1c   : > { %551 = shalt.err (!%p548_p7)
}
  0x1d   : > { %s552_s7 = scalar_lea.vmem %s741_s22, 512  ;;  %p560_p2 = scmp.lt.s32.totalorder %s741_s22, %s741_s22 }
  0x1e   : > { %p553_p9 = scmp.ne.s32.totalorder %s741_s22, %s552_s7  ;;  %p561_p6 = scmp.lt.s32.totalorder %s552_s7, %s552_s7 }
  0x20   : > { %p555_p10 = pnand %p553_p9, %p541_p13  ;;  %p562_p4 = por %p561_p6, %p560_p2 }
  0x22   : > { %p556_p1 = pneg %p555_p10 }
  0x24   : > { %p563_p8 = pnand %p562_p4, %p556_p1 }
  0x26   : > { %566 = shalt.err (!%p563_p8)
}
  0x27   : > { %s670_s8 = smov 128   ;;  %s671_s9 = smov 8  }
  0x28   : > { %484 = dma.hbm_to_vmem [thread:$0]  (!%p748_p11), %s901_s1, 512, %s741_s22, [#allocation6], %s670_s8, %s670_s8, %s671_s9  }
  0x29   : > { %p25_p2 = scmp.eq.s32.totalorder %s24_s26, 0  ;;  %p34_p1 = scmp.ne.s32.totalorder %s663_s14, %s659_s13 }
  0x2a   : > { %p35_p4 = scmp.eq.s32.totalorder %s667_s15, 0  ;;  %p494_p6 = scmp.lt.s32.totalorder %s667_s15, 2 }
  0x2b   : > { %s784_s17 = scalar_select %p25_p2, %s663_s14, %s27_s25  }
  0x2c   : > { %p36_p8 = por %p35_p4, %p34_p1  ;;  %p911_p10 = scmp.eq.s32.totalorder %s718_s16, 1 }
  0x2d   : > { %s148_s27 = sand.u32 1, %s663_s14   ;;  %s440_s28 = sshll.u32 %s667_s15, 7 }
  0x2e   : > { %p788_p12 = por %p911_p10, %p34_p1  ;;  %s439_s29 = sshll.u32 %s148_s27, 3 }
  0x2f   : > { %s797_s4 = scalar_lea.hbm %s900_s0, %s440_s28  ;;  %s152_s22 = scalar_lea.vmem [#allocation2], %s439_s29 }
  0x30   : > { %s159_s25 = sshll.u32 %s152_s22, 4  ;;  %p799_p11 = pnand %p494_p6, %p36_p8  ;;  %s803_s25 = int_to_ptr.vmem [resolvable:$true] %s159_s25 }
  0x31   : > { %s149_s5 = scalar_lea.sflag [#allocation3], %s148_s27  ;;  %s567_s6 = scalar_lea.hbm %s797_s4, 128 }
  0x32   : > { %p568_p13 = scmp.ne.s32.totalorder %s797_s4, %s567_s6  ;;  %p569_p0 = pneg %p799_p11 }
  0x33   : > { %s572_s9 = scalar_lea.hbm %s900_s0, 256  ;;  %p573_p7 = scmp.lt.u32.totalorder %s797_s4, %s900_s0 }
  0x34   : > { %p570_p3 = pnand %p569_p0, %p568_p13  ;;  %p574_p9 = scmp.lt.u32.totalorder %s572_s9, %s567_s6 }
  0x35   : > { %p576_p1 = scmp.lt.u32.totalorder %s567_s6, %s797_s4 }
  0x36   : > { %p571_p5 = pneg %p570_p3  ;;  %p575_p2 = por %p574_p9, %p573_p7 }
  0x38   : > { %p577_p4 = por %p576_p1, %p575_p2 }
  0x3a   : > { %p578_p6 = pnand %p577_p4, %p571_p5 }
  0x3c   : > { %581 = shalt.err (!%p578_p6)
}
  0x3d   : > { %s582_s27 = scalar_lea.vmem %s803_s25, 128  ;;  %s672_s28 = smov [#allocation2]  }
  0x3e   : > { %p583_p8 = scmp.ne.s32.totalorder %s803_s25, %s582_s27  ;;  %s587_s29 = sshll.u32 %s672_s28, 4  ;;  %s588_s29 = int_to_ptr.vmem [resolvable:$false] %s587_s29 }
  0x3f   : > { %s589_s23 = scalar_lea.vmem %s588_s29, 256  ;;  %p590_p3 = scmp.lt.s32.totalorder %s803_s25, %s588_s29 }
  0x40   : > { %p585_p10 = pnand %p583_p8, %p569_p0  ;;  %p591_p7 = scmp.lt.s32.totalorder %s589_s23, %s582_s27 }
  0x42   : > { %p586_p13 = pneg %p585_p10  ;;  %p592_p9 = por %p591_p7, %p590_p3 }
  0x44   : > { %p593_p2 = pnand %p592_p9, %p586_p13 }
  0x46   : > { %596 = shalt.err (!%p593_p2)
}
  0x47   : > { %488 = dma.hbm_to_vmem [thread:$0]  (!%p799_p11), %s797_s4, 128, %s803_s25, %s149_s5  }
  0x48   : > { %p914_p5 = scmp.ne.s32.totalorder %s909_s20, 0 }
  0x49   : > { %s833_s30 = sand.u32 (!%p914_p5), 1, %s659_s13   ;;  %p915_p0 = scmp.ne.s32.totalorder (!%p914_p5), %s907_s18, 0 }
  0x4a   : > { %168 = sbr.rel (%p914_p5) target bundleno = 1517 (0x5ed), region = 32  ;;  %s442_s22 = sshll.u32 (!%p914_p5), %s833_s30, 3 }
  0x4b   : > { %s171_s6 = scalar_lea.sflag (!%p914_p5), [#allocation3], %s833_s30  ;;  %s174_s7 = scalar_lea.vmem (!%p914_p5), [#allocation2], %s442_s22 }
  0x51   : > { %642 = dma.done.wait (%p915_p0), %s171_s6, 128  }
  0x52   : > { %644 = vsyncadd (%p915_p0), %s171_s6, 4294967168  ;;  %p916_p11 = scmp.eq.s32.totalorder %s718_s16, 0 }
  0x54   : > { %646 = dma.done.wait (%p916_p11), [#allocation6], 512   ;;  %p917_p1 = pmov %p916_p11 }
  0x55   : > { %v673_v0 = vmov 0.0|0.0   ;;  %vm674_vm0 = vmmov 0   ;;  %v675_v1 = vmov 0.0   ;;  %v202_v2 = vld [vmem:[#allocation5] sm:$0xff]  ;;  %v203_v3 = vld [vmem:[#allocation5 + $0x8] sm:$0xff]  ;;  %v204_v4 = vld [vmem:[#allocation5 + $0x10] sm:$0xff]  ;;  %v287_v13 = vlaneseq }
  0x56   : > { %648 = vsyncadd (%p917_p1), [#allocation6], 4294966784  ;;  %467 = vmatprep.subr.bf16.mxu0 %v673_v0  ;;  %464 = vmatprep.mubr.msk.f32.mxu0 %vm674_vm0, %v675_v1  ;;  %v468_v5 = vpack.c.bf16 %v203_v3, %v202_v2  ;;  %v205_v6 = vld [vmem:[#allocation5 + $0x18] sm:$0xff]  ;;  %vm213_vm1 = vcmask 261120   ;;  %v445_v9 = vld [vmem:[%s902_s2] ss:$0 sm:$0xff] }
  0x57   : > { %v471_v7 = vpack.c.bf16 %v205_v6, %v204_v4  ;;  %v201_v8 = vld [vmem:[%s174_s7] sm:$0xff]  ;;  %v288_v14 = vand.u32 127, %v287_v13  ;;  %s448_s4 = sshll.u32 %s718_s16, 7  ;;  %s200_s25 = scalar_lea.vmem [#allocation7], %s442_s22 }
  0x58   : > { %469 = vmatpush3.bf16.msra.mxu0 %v468_v5  ;;  %s355_s26 = sshll.u32 %s200_s25, 4  ;;  %s856_s9 = scalar_lea.hbm %s903_s3, %s448_s4  ;;  %s858_s26 = int_to_ptr.vmem [resolvable:$true] %s355_s26 }
  0x59   : > { %470 = vmatprep.subr.bf16.mxu0 %v673_v0  ;;  %s342_s10 = scalar_lea.sflag [#allocation4], %s833_s30  ;;  %s597_s11 = scalar_lea.vmem %s858_s26, 128 }
  0x5a   : > { %p598_p4 = scmp.ne.s32.totalorder %s858_s26, %s597_s11  ;;  %s676_s16 = smov [#allocation7]  }
  0x5b   : > { %s601_s27 = sshll.u32 %s676_s16, 4  ;;  %s602_s27 = int_to_ptr.vmem [resolvable:$false] %s601_s27 }
  0x5c   : > { %472 = vmatpush3.bf16.msra.mxu0 %v471_v7  ;;  %p599_p6 = pnand %p598_p4, %p788_p12  ;;  %s603_s28 = scalar_lea.vmem %s602_s27, 256 }
  0x5d   : > { %p604_p10 = scmp.lt.s32.totalorder %s858_s26, %s602_s27  ;;  %p605_p13 = scmp.lt.s32.totalorder %s603_s28, %s597_s11 }
  0x5e   : > { %p600_p8 = pneg %p599_p6 }
  0x5f   : > { %465 = vmatmul.mubr.msk.f32.vlgmr.msra.gmra.mrb[0].mxu0 %vm213_vm1, %v201_v8  ;;  %p606_p3 = por %p605_p13, %p604_p10 }
  0x61   : > { %p607_p7 = pnand %p606_p3, %p600_p8 }
 0x132   : > { %v283_v10 = vpop.f32.mrb[0].mxu0 }
 0x133   : > { %v284_v11 = vadd.f32 %v445_v9, %v283_v10  ;;  %v466_v12 = vpop.f32.mrb[1].mxu0 }
 0x135   : > { %289 = vmax.xlane.f32.xlu0 %v284_v11 }
 0x1c2   : > { %v290_v15 = vpop.xlane.xlu0 %289 }
 0x1c3   : > { %vm291_vm2 = vcmp.eq.f32.partialorder %v284_v11, %v290_v15 }
 0x1c4   : > { %v292_v16 = vsel %vm291_vm2, %v288_v14, 128 }
 0x1c5   : > { %v294_v17 = vshra.s32 %v292_v16, 16  ;;  %v293_v19 = vand.u32 65535, %v292_v16 }
 0x1c7   : > { %v296_v18 = vcvt.s32.f32 %v294_v17  ;;  %v295_v21 = vcvt.s32.f32 %v293_v19 }
 0x1c9   : > { %297 = vmin.xlane.f32.xlu0 %v296_v18 }
 0x256   : > { %v298_v20 = vpop.xlane.xlu0 %297 }
 0x257   : > { %vm299_vm3 = vcmp.eq.f32.partialorder %v296_v18, %v298_v20  ;;  %v304_v23 = vcvt.f32.s32 %v298_v20 }
 0x258   : > { %v300_v22 = vsel %vm299_vm3, %v295_v21, inf }
 0x259   : > { %301 = vmin.xlane.f32.xlu1 %v300_v22  ;;  %v305_v25 = vshll.u32 %v304_v23, 16 }
 0x2e6   : > { %v302_v24 = vpop.xlane.xlu1 %301 }
 0x2e7   : > { %v303_v26 = vcvt.f32.s32 %v302_v24 }
 0x2e9   : > { %v306_v27 = vadd.s32 %v305_v25, %v303_v26 }
 0x2eb   : > { %vm307_vm4 = vcmp.eq.s32.totalorder %v288_v14, %v306_v27 }
 0x2ec   : > { %v308_v28 = vsel %vm307_vm4, -inf, %v284_v11 }
 0x2ed   : > { %309 = vmax.xlane.f32.xlu1 %v308_v28 }
 0x37a   : > { %v310_v29 = vpop.xlane.xlu1 %309 }
 0x37b   : > { %vm311_vm5 = vcmp.eq.f32.partialorder %v308_v28, %v310_v29 }
 0x37c   : > { %v312_v30 = vsel %vm311_vm5, %v288_v14, 128 }
 0x37d   : > { %v314_v31 = vshra.s32 %v312_v30, 16  ;;  %v313_v33 = vand.u32 65535, %v312_v30 }
 0x37f   : > { %v316_v32 = vcvt.s32.f32 %v314_v31  ;;  %v315_v35 = vcvt.s32.f32 %v313_v33 }
 0x381   : > { %317 = vmin.xlane.f32.xlu0 %v316_v32 }
 0x40e   : > { %v318_v34 = vpop.xlane.xlu0 %317 }
 0x40f   : > { %vm319_vm6 = vcmp.eq.f32.partialorder %v316_v32, %v318_v34  ;;  %v324_v37 = vcvt.f32.s32 %v318_v34 }
 0x410   : > { %v320_v36 = vsel %vm319_vm6, %v315_v35, inf }
 0x411   : > { %321 = vmin.xlane.f32.xlu1 %v320_v36  ;;  %v325_v39 = vshll.u32 %v324_v37, 16 }
 0x49e   : > { %v322_v38 = vpop.xlane.xlu1 %321 }
 0x49f   : > { %v323_v40 = vcvt.f32.s32 %v322_v38 }
 0x4a1   : > { %v326_v41 = vadd.s32 %v325_v39, %v323_v40 }
 0x4a3   : > { %vm327_vm7 = vcmp.eq.s32.totalorder %v288_v14, %v326_v41 }
 0x4a4   : > { %v328_v42 = vsel %vm327_vm7, -inf, %v308_v28 }
 0x4a5   : > { %vm329_vm8 = vcmp.eq.f32.partialorder %v328_v42, -inf }
 0x4a6   : > { %v330_v43 = vsel %vm329_vm8, %v284_v11, -inf }
 0x4a7   : > { %331 = vmax.xlane.f32.xlu0 %v330_v43 }
 0x534   : > { %v332_v44 = vpop.xlane.xlu0 %331 }
 0x535   : > { %v333_v45 = vsub.f32 %v330_v43, %v332_v44 }
 0x537   : > { %v334_v46 = vmul.f32 1.442695, %v333_v45 }
 0x539   : > { %535 = vpow2.f32 %v334_v46 }
 0x543   : > { %v536_v47 = vpop.eup %535 }
 0x544   : > { %336 = vadd.xlane.f32.xlu1 %v536_v47 }
 0x5d1   : > { %v337_v48 = vpop.xlane.xlu1 %336 }
 0x5d2   : > { %537 = vrcp.f32 %v337_v48 }
 0x5dc   : > { %v538_v49 = vpop.eup %537 }
 0x5dd   : > { %v339_v50 = vmul.f32 %v538_v49, %v536_v47 }
 0x5df   : > { %340 = vst [vmem:[%s200_s25] sm:$0xff] %v339_v50 }
 0x5e0   : > { %610 = shalt.err (!%p607_p7)
}
 0x5e1   : > { %s611_s29 = scalar_lea.hbm %s856_s9, 128  ;;  %s615_s22 = scalar_lea.hbm %s903_s3, 256 }
 0x5e2   : > { %p612_p9 = scmp.ne.s32.totalorder %s856_s9, %s611_s29  ;;  %p616_p0 = scmp.lt.u32.totalorder %s856_s9, %s903_s3 }
 0x5e3   : > { %p617_p11 = scmp.lt.u32.totalorder %s615_s22, %s611_s29  ;;  %p619_p4 = scmp.lt.u32.totalorder %s611_s29, %s856_s9 }
 0x5e4   : > { %p613_p2 = pnand %p612_p9, %p788_p12 }
 0x5e5   : > { %p618_p1 = por %p617_p11, %p616_p0 }
 0x5e6   : > { %p614_p5 = pneg %p613_p2 }
 0x5e7   : > { %p620_p6 = por %p619_p4, %p618_p1 }
 0x5e9   : > { %p621_p8 = pnand %p620_p6, %p614_p5 }
 0x5eb   : > { %624 = shalt.err (!%p621_p8)
}
 0x5ec   : > { %479 = dma.vmem_to_hbm [thread:$0]  (%p788_p12), %s858_s26, 128, %s856_s9, %s342_s10  }
 0x5ed PF: > { %s367_s18 = sand.u32 1, %s655_s12   ;;  %p918_p10 = scmp.ne.s32.totalorder %s908_s19, 0 }
 0x5ee   : > { %p919_p13 = scmp.ge.s32.totalorder %s667_s15, 2  ;;  %s368_s20 = scalar_lea.sflag [#allocation4], %s367_s18 }
 0x5f0   : > { %p490_p3 = pnand %p919_p13, %p918_p10 }
 0x5f2   : > { %650 = dma.done.wait (!%p490_p3), %s368_s20, 128  }
 0x5f3   : > { %652 = vsyncadd (!%p490_p3), %s368_s20, 4294967168  ;;  %p17_p7 = scmp.ge.s32.totalorder %s753_s24, 4   ;;  %s920_s12 = smov %s659_s13 }
 0x5f4   : > { %s921_s13 = smov %s663_s14  ;;  %s922_s14 = smov %s784_s17 }
 0x5f5   : > { %s923_s15 = smov %s753_s24  ;;  %19 = sbr.rel (!%p17_p7) target bundleno = 6 (0x6), region = 81 }
 0x5fc   :  { %373 = vsyncpa [#allocation3], 1 }
 0x5fd   :  { %375 = vsyncpa [#allocation3 + $0x1], 1 }
 0x5fe   :  { %376 = vsyncpa [#allocation6], 1 }
 0x5ff   :  { %377 = vsyncpa [#allocation4], 1 }
 0x600   :  { %379 = vsyncpa [#allocation4 + $0x1], 1 }

// kernel: tpu_custom_call.1
= control target key start
LH: loop header
LB: loop body
LE: loop exit
PB: predicated region body
PF: predicated region fallthrough
CT: control target
= control target key end

     0   :  { %8 = vsyncpa [#allocation3], 0  ;;  %s900_s0 = inlined_call_operand.hbm [shape: f32[16,32], index: 0, kind: input, shape index: {}]   ;;  %s901_s1 = inlined_call_operand.hbm [shape: f32[32,128], index: 1, kind: input, shape index: {}]   ;;  %s902_s2 = inlined_call_operand.vmem [shape: f32[1,128], index: 2, kind: input, shape index: {}]   ;;  %s903_s3 = inlined_call_operand.hbm [shape: f32[16,128], index: 3, kind: output, shape index: {}]  }
   0x1   :  { %10 = vsyncpa [#allocation3 + $0x1], 0 }
   0x2   :  { %11 = vsyncpa [#allocation6], 0 }
   0x3   :  { %12 = vsyncpa [#allocation4], 0 }
   0x4   :  { %14 = vsyncpa [#allocation4 + $0x1], 0  ;;  %s697_s12 = smov 0   ;;  %s699_s13 = smov 0  }
   0x5   :  { %s701_s14 = smov 0   ;;  %s703_s15 = smov 0  }
   0x6 LB: > { %s718_s16 = sadd.s32 4294967295, %s667_s15   ;;  %s435_s17 = sadd.s32 4294967294, %s667_s15   ;;  %s667_s15 = sphi %s703_s15, %s923_s15   ;;  %s663_s14 = sphi %s701_s14, %s922_s14   ;;  %s659_s13 = sphi %s699_s13, %s921_s13   ;;  %s655_s12 = sphi %s697_s12, %s920_s12  }
   0x7   : > { %p40_p0 = scmp.ne.s32.totalorder %s659_s13, %s655_s12  ;;  %p904_p1 = scmp.eq.s32.totalorder %s718_s16, 0 }
   0x8   : > { %p112_p3 = scmp.eq.s32.totalorder %s435_s17, 1  ;;  %p436_p5 = scmp.ge.s32.totalorder %s667_s15, 1 }
   0x9   : > { %p727_p4 = por %p904_p1, %p40_p0  ;;  %p119_p7 = scmp.lt.s32.totalorder %s667_s15, 3 }
   0xa   : > { %p732_p6 = por %p112_p3, %p40_p0  ;;  %s669_s21 = smov [#allocation5]  }
   0xb   : > { %s907_s18 = scalar_select %p727_p4, 1, 0 }
   0xc   : > { %s908_s19 = scalar_select %p732_p6, 1, 0 }
   0xd   : > { %p737_p8 = pnand %p436_p5, %p119_p7  ;;  %s131_s22 = sshll.u32 %s669_s21, 4  ;;  %s741_s22 = int_to_ptr.vmem [resolvable:$true] %s131_s22 }
   0xe   : > { %s753_s24 = sadd.s32 1, %s667_s15   ;;  %s27_s25 = sadd.s32 1, %s663_s14 }
   0xf   : > { %s909_s20 = scalar_select %p737_p8, 1, 0 }
  0x10   : > { %p481_p9 = pneg %p737_p8  ;;  %s24_s26 = ssub.s32 %s667_s15, %s753_s24 }
  0x11   : > { %s539_s29 = scalar_lea.hbm %s901_s1, 512 }
  0x12   : > { %p748_p11 = pnand %p481_p9, %p904_p1  ;;  %p540_p12 = scmp.ne.s32.totalorder %s901_s1, %s539_s29 }
  0x13   : > { %p546_p5 = scmp.lt.u32.totalorder %s539_s29, %s901_s1 }
  0x14   : > { %p541_p13 = pneg %p748_p11 }
  0x16   : > { %p542_p0 = pnand %p541_p13, %p540_p12 }
  0x18   : > { %p543_p3 = pneg %p542_p0 }
  0x1a   : > { %p548_p7 = pnand %p546_p5, %p543_p3 }
  0x1c   : > { %551 = shalt.err (!%p548_p7)
}
  0x1d   : > { %s552_s7 = scalar_lea.vmem %s741_s22, 512  ;;  %p560_p2 = scmp.lt.s32.totalorder %s741_s22, %s741_s22 }
  0x1e   : > { %p553_p9 = scmp.ne.s32.totalorder %s741_s22, %s552_s7  ;;  %p561_p6 = scmp.lt.s32.totalorder %s552_s7, %s552_s7 }
  0x20   : > { %p555_p10 = pnand %p553_p9, %p541_p13  ;;  %p562_p4 = por %p561_p6, %p560_p2 }
  0x22   : > { %p556_p1 = pneg %p555_p10 }
  0x24   : > { %p563_p8 = pnand %p562_p4, %p556_p1 }
  0x26   : > { %566 = shalt.err (!%p563_p8)
}
  0x27   : > { %s670_s8 = smov 128   ;;  %s671_s9 = smov 8  }
  0x28   : > { %484 = dma.hbm_to_vmem [thread:$0]  (!%p748_p11), %s901_s1, 512, %s741_s22, [#allocation6], %s670_s8, %s670_s8, %s671_s9  }
  0x29   : > { %p25_p2 = scmp.eq.s32.totalorder %s24_s26, 0  ;;  %p34_p1 = scmp.ne.s32.totalorder %s663_s14, %s659_s13 }
  0x2a   : > { %p35_p4 = scmp.eq.s32.totalorder %s667_s15, 0  ;;  %p494_p6 = scmp.lt.s32.totalorder %s667_s15, 2 }
  0x2b   : > { %s784_s17 = scalar_select %p25_p2, %s663_s14, %s27_s25  }
  0x2c   : > { %p36_p8 = por %p35_p4, %p34_p1  ;;  %p911_p10 = scmp.eq.s32.totalorder %s718_s16, 1 }
  0x2d   : > { %s148_s27 = sand.u32 1, %s663_s14   ;;  %s440_s28 = sshll.u32 %s667_s15, 7 }
  0x2e   : > { %p788_p12 = por %p911_p10, %p34_p1  ;;  %s439_s29 = sshll.u32 %s148_s27, 3 }
  0x2f   : > { %s797_s4 = scalar_lea.hbm %s900_s0, %s440_s28  ;;  %s152_s22 = scalar_lea.vmem [#allocation2], %s439_s29 }
  0x30   : > { %s159_s25 = sshll.u32 %s152_s22, 4  ;;  %p799_p11 = pnand %p494_p6, %p36_p8  ;;  %s803_s25 = int_to_ptr.vmem [resolvable:$true] %s159_s25 }
  0x31   : > { %s149_s5 = scalar_lea.sflag [#allocation3], %s148_s27  ;;  %s567_s6 = scalar_lea.hbm %s797_s4, 128 }
  0x32   : > { %p568_p13 = scmp.ne.s32.totalorder %s797_s4, %s567_s6  ;;  %p569_p0 = pneg %p799_p11 }
  0x33   : > { %s572_s9 = scalar_lea.hbm %s900_s0, 256  ;;  %p573_p7 = scmp.lt.u32.totalorder %s797_s4, %s900_s0 }
  0x34   : > { %p570_p3 = pnand %p569_p0, %p568_p13  ;;  %p574_p9 = scmp.lt.u32.totalorder %s572_s9, %s567_s6 }
  0x35   : > { %p576_p1 = scmp.lt.u32.totalorder %s567_s6, %s797_s4 }
  0x36   : > { %p571_p5 = pneg %p570_p3  ;;  %p575_p2 = por %p574_p9, %p573_p7 }
  0x38   : > { %p577_p4 = por %p576_p1, %p575_p2 }
  0x3a   : > { %p578_p6 = pnand %p577_p4, %p571_p5 }
  0x3c   : > { %581 = shalt.err (!%p578_p6)
}
  0x3d   : > { %s582_s27 = scalar_lea.vmem %s803_s25, 128  ;;  %s672_s28 = smov [#allocation2]  }
  0x3e   : > { %p583_p8 = scmp.ne.s32.totalorder %s803_s25, %s582_s27  ;;  %s587_s29 = sshll.u32 %s672_s28, 4  ;;  %s588_s29 = int_to_ptr.vmem [resolvable:$false] %s587_s29 }
  0x3f   : > { %s589_s23 = scalar_lea.vmem %s588_s29, 256  ;;  %p590_p3 = scmp.lt.s32.totalorder %s803_s25, %s588_s29 }
  0x40   : > { %p585_p10 = pnand %p583_p8, %p569_p0  ;;  %p591_p7 = scmp.lt.s32.totalorder %s589_s23, %s582_s27 }
  0x42   : > { %p586_p13 = pneg %p585_p10  ;;  %p592_p9 = por %p591_p7, %p590_p3 }
  0x44   : > { %p593_p2 = pnand %p592_p9, %p586_p13 }
  0x46   : > { %596 = shalt.err (!%p593_p2)
}
  0x47   : > { %488 = dma.hbm_to_vmem [thread:$0]  (!%p799_p11), %s797_s4, 128, %s803_s25, %s149_s5  }
  0x48   : > { %p914_p5 = scmp.ne.s32.totalorder %s909_s20, 0 }
  0x49   : > { %s833_s30 = sand.u32 (!%p914_p5), 1, %s659_s13   ;;  %p915_p0 = scmp.ne.s32.totalorder (!%p914_p5), %s907_s18, 0 }
  0x4a   : > { %168 = sbr.rel (%p914_p5) target bundleno = 1517 (0x5ed), region = 32  ;;  %s442_s22 = sshll.u32 (!%p914_p5), %s833_s30, 3 }
  0x4b   : > { %s171_s6 = scalar_lea.sflag (!%p914_p5), [#allocation3], %s833_s30  ;;  %s174_s7 = scalar_lea.vmem (!%p914_p5), [#allocation2], %s442_s22 }
  0x51   : > { %642 = dma.done.wait (%p915_p0), %s171_s6, 128  }
  0x52   : > { %644 = vsyncadd (%p915_p0), %s171_s6, 4294967168  ;;  %p916_p11 = scmp.eq.s32.totalorder %s718_s16, 0 }
  0x54   : > { %646 = dma.done.wait (%p916_p11), [#allocation6], 512   ;;  %p917_p1 = pmov %p916_p11 }
  0x55   : > { %v673_v0 = vmov 0.0|0.0   ;;  %vm674_vm0 = vmmov 0   ;;  %v675_v1 = vmov 0.0   ;;  %v202_v2 = vld [vmem:[#allocation5] sm:$0xff]  ;;  %v203_v3 = vld [vmem:[#allocation5 + $0x8] sm:$0xff]  ;;  %v204_v4 = vld [vmem:[#allocation5 + $0x10] sm:$0xff]  ;;  %v287_v13 = vlaneseq }
  0x56   : > { %648 = vsyncadd (%p917_p1), [#allocation6], 4294966784  ;;  %467 = vmatprep.subr.bf16.mxu0 %v673_v0  ;;  %464 = vmatprep.mubr.msk.f32.mxu0 %vm674_vm0, %v675_v1  ;;  %v468_v5 = vpack.c.bf16 %v203_v3, %v202_v2  ;;  %v205_v6 = vld [vmem:[#allocation5 + $0x18] sm:$0xff]  ;;  %vm213_vm1 = vcmask 261120   ;;  %v445_v9 = vld [vmem:[%s902_s2] ss:$0 sm:$0xff] }
  0x57   : > { %v471_v7 = vpack.c.bf16 %v205_v6, %v204_v4  ;;  %v201_v8 = vld [vmem:[%s174_s7] sm:$0xff]  ;;  %v288_v14 = vand.u32 127, %v287_v13  ;;  %s448_s4 = sshll.u32 %s718_s16, 7  ;;  %s200_s25 = scalar_lea.vmem [#allocation7], %s442_s22 }
  0x58   : > { %469 = vmatpush3.bf16.msra.mxu0 %v468_v5  ;;  %s355_s26 = sshll.u32 %s200_s25, 4  ;;  %s856_s9 = scalar_lea.hbm %s903_s3, %s448_s4  ;;  %s858_s26 = int_to_ptr.vmem [resolvable:$true] %s355_s26 }
  0x59   : > { %470 = vmatprep.subr.bf16.mxu0 %v673_v0  ;;  %s342_s10 = scalar_lea.sflag [#allocation4], %s833_s30  ;;  %s597_s11 = scalar_lea.vmem %s858_s26, 128 }
  0x5a   : > { %p598_p4 = scmp.ne.s32.totalorder %s858_s26, %s597_s11  ;;  %s676_s16 = smov [#allocation7]  }
  0x5b   : > { %s601_s27 = sshll.u32 %s676_s16, 4  ;;  %s602_s27 = int_to_ptr.vmem [resolvable:$false] %s601_s27 }
  0x5c   : > { %472 = vmatpush3.bf16.msra.mxu0 %v471_v7  ;;  %p599_p6 = pnand %p598_p4, %p788_p12  ;;  %s603_s28 = scalar_lea.vmem %s602_s27, 256 }
  0x5d   : > { %p604_p10 = scmp.lt.s32.totalorder %s858_s26, %s602_s27  ;;  %p605_p13 = scmp.lt.s32.totalorder %s603_s28, %s597_s11 }
  0x5e   : > { %p600_p8 = pneg %p599_p6 }
  0x5f   : > { %465 = vmatmul.mubr.msk.f32.vlgmr.msra.gmra.mrb[0].mxu0 %vm213_vm1, %v201_v8  ;;  %p606_p3 = por %p605_p13, %p604_p10 }
  0x61   : > { %p607_p7 = pnand %p606_p3, %p600_p8 }
 0x132   : > { %v283_v10 = vpop.f32.mrb[0].mxu0 }
 0x133   : > { %v284_v11 = vadd.f32 %v445_v9, %v283_v10  ;;  %v466_v12 = vpop.f32.mrb[1].mxu0 }
 0x135   : > { %289 = vmax.xlane.f32.xlu0 %v284_v11 }
 0x1c2   : > { %v290_v15 = vpop.xlane.xlu0 %289 }
 0x1c3   : > { %vm291_vm2 = vcmp.eq.f32.partialorder %v284_v11, %v290_v15 }
 0x1c4   : > { %v292_v16 = vsel %vm291_vm2, %v288_v14, 128 }
 0x1c5   : > { %v294_v17 = vshra.s32 %v292_v16, 16  ;;  %v293_v19 = vand.u32 65535, %v292_v16 }
 0x1c7   : > { %v296_v18 = vcvt.s32.f32 %v294_v17  ;;  %v295_v21 = vcvt.s32.f32 %v293_v19 }
 0x1c9   : > { %297 = vmin.xlane.f32.xlu0 %v296_v18 }
 0x256   : > { %v298_v20 = vpop.xlane.xlu0 %297 }
 0x257   : > { %vm299_vm3 = vcmp.eq.f32.partialorder %v296_v18, %v298_v20  ;;  %v304_v23 = vcvt.f32.s32 %v298_v20 }
 0x258   : > { %v300_v22 = vsel %vm299_vm3, %v295_v21, inf }
 0x259   : > { %301 = vmin.xlane.f32.xlu1 %v300_v22  ;;  %v305_v25 = vshll.u32 %v304_v23, 16 }
 0x2e6   : > { %v302_v24 = vpop.xlane.xlu1 %301 }
 0x2e7   : > { %v303_v26 = vcvt.f32.s32 %v302_v24 }
 0x2e9   : > { %v306_v27 = vadd.s32 %v305_v25, %v303_v26 }
 0x2eb   : > { %vm307_vm4 = vcmp.eq.s32.totalorder %v288_v14, %v306_v27 }
 0x2ec   : > { %v308_v28 = vsel %vm307_vm4, -inf, %v284_v11 }
 0x2ed   : > { %309 = vmax.xlane.f32.xlu1 %v308_v28 }
 0x37a   : > { %v310_v29 = vpop.xlane.xlu1 %309 }
 0x37b   : > { %vm311_vm5 = vcmp.eq.f32.partialorder %v308_v28, %v310_v29 }
 0x37c   : > { %v312_v30 = vsel %vm311_vm5, %v288_v14, 128 }
 0x37d   : > { %v314_v31 = vshra.s32 %v312_v30, 16  ;;  %v313_v33 = vand.u32 65535, %v312_v30 }
 0x37f   : > { %v316_v32 = vcvt.s32.f32 %v314_v31  ;;  %v315_v35 = vcvt.s32.f32 %v313_v33 }
 0x381   : > { %317 = vmin.xlane.f32.xlu0 %v316_v32 }
 0x40e   : > { %v318_v34 = vpop.xlane.xlu0 %317 }
 0x40f   : > { %vm319_vm6 = vcmp.eq.f32.partialorder %v316_v32, %v318_v34  ;;  %v324_v37 = vcvt.f32.s32 %v318_v34 }
 0x410   : > { %v320_v36 = vsel %vm319_vm6, %v315_v35, inf }
 0x411   : > { %321 = vmin.xlane.f32.xlu1 %v320_v36  ;;  %v325_v39 = vshll.u32 %v324_v37, 16 }
 0x49e   : > { %v322_v38 = vpop.xlane.xlu1 %321 }
 0x49f   : > { %v323_v40 = vcvt.f32.s32 %v322_v38 }
 0x4a1   : > { %v326_v41 = vadd.s32 %v325_v39, %v323_v40 }
 0x4a3   : > { %vm327_vm7 = vcmp.eq.s32.totalorder %v288_v14, %v326_v41 }
 0x4a4   : > { %v328_v42 = vsel %vm327_vm7, -inf, %v308_v28 }
 0x4a5   : > { %vm329_vm8 = vcmp.eq.f32.partialorder %v328_v42, -inf }
 0x4a6   : > { %v330_v43 = vsel %vm329_vm8, %v284_v11, -inf }
 0x4a7   : > { %331 = vmax.xlane.f32.xlu0 %v330_v43 }
 0x534   : > { %v332_v44 = vpop.xlane.xlu0 %331 }
 0x535   : > { %v333_v45 = vsub.f32 %v330_v43, %v332_v44 }
 0x537   : > { %v334_v46 = vmul.f32 1.442695, %v333_v45 }
 0x539   : > { %535 = vpow2.f32 %v334_v46 }
 0x543   : > { %v536_v47 = vpop.eup %535 }
 0x544   : > { %336 = vadd.xlane.f32.xlu1 %v536_v47 }
 0x5d1   : > { %v337_v48 = vpop.xlane.xlu1 %336 }
 0x5d2   : > { %537 = vrcp.f32 %v337_v48 }
 0x5dc   : > { %v538_v49 = vpop.eup %537 }
 0x5dd   : > { %v339_v50 = vmul.f32 %v538_v49, %v536_v47 }
 0x5df   : > { %340 = vst [vmem:[%s200_s25] sm:$0xff] %v339_v50 }
 0x5e0   : > { %610 = shalt.err (!%p607_p7)
}
 0x5e1   : > { %s611_s29 = scalar_lea.hbm %s856_s9, 128  ;;  %s615_s22 = scalar_lea.hbm %s903_s3, 256 }
 0x5e2   : > { %p612_p9 = scmp.ne.s32.totalorder %s856_s9, %s611_s29  ;;  %p616_p0 = scmp.lt.u32.totalorder %s856_s9, %s903_s3 }
 0x5e3   : > { %p617_p11 = scmp.lt.u32.totalorder %s615_s22, %s611_s29  ;;  %p619_p4 = scmp.lt.u32.totalorder %s611_s29, %s856_s9 }
 0x5e4   : > { %p613_p2 = pnand %p612_p9, %p788_p12 }
 0x5e5   : > { %p618_p1 = por %p617_p11, %p616_p0 }
 0x5e6   : > { %p614_p5 = pneg %p613_p2 }
 0x5e7   : > { %p620_p6 = por %p619_p4, %p618_p1 }
 0x5e9   : > { %p621_p8 = pnand %p620_p6, %p614_p5 }
 0x5eb   : > { %624 = shalt.err (!%p621_p8)
}
 0x5ec   : > { %479 = dma.vmem_to_hbm [thread:$0]  (%p788_p12), %s858_s26, 128, %s856_s9, %s342_s10  }
 0x5ed PF: > { %s367_s18 = sand.u32 1, %s655_s12   ;;  %p918_p10 = scmp.ne.s32.totalorder %s908_s19, 0 }
 0x5ee   : > { %p919_p13 = scmp.ge.s32.totalorder %s667_s15, 2  ;;  %s368_s20 = scalar_lea.sflag [#allocation4], %s367_s18 }
 0x5f0   : > { %p490_p3 = pnand %p919_p13, %p918_p10 }
 0x5f2   : > { %650 = dma.done.wait (!%p490_p3), %s368_s20, 128  }
 0x5f3   : > { %652 = vsyncadd (!%p490_p3), %s368_s20, 4294967168  ;;  %p17_p7 = scmp.ge.s32.totalorder %s753_s24, 4   ;;  %s920_s12 = smov %s659_s13 }
 0x5f4   : > { %s921_s13 = smov %s663_s14  ;;  %s922_s14 = smov %s784_s17 }
 0x5f5   : > { %s923_s15 = smov %s753_s24  ;;  %19 = sbr.rel (!%p17_p7) target bundleno = 6 (0x6), region = 81 }
 0x5fc   :  { %373 = vsyncpa [#allocation3], 1 }
 0x5fd   :  { %375 = vsyncpa [#allocation3 + $0x1], 1 }
 0x5fe   :  { %376 = vsyncpa [#allocation6], 1 }
 0x5ff   :  { %377 = vsyncpa [#allocation4], 1 }
 0x600   :  { %379 = vsyncpa [#allocation4 + $0x1], 1 }

</bundles_post_ra>
